<compile_context>
chip_gen: v7x
topology: tpu7x:2x2x1
jax: 0.10.0
libtpu: 0.0.40
codegen_flags: <defaults>
</compile_context>

<pallas_src>
import functools

import jax
import jax.numpy as jnp
from jax.experimental import pallas as pl
from jax.experimental.pallas import tpu as pltpu


_NEG = -1e30  # stands in for MaxPool2d's implicit -inf padding (bf16-representable)


def _round_up(x, m):
    return (x + m - 1) // m * m


# ----------------------------- Pallas kernels ------------------------------


def _pw_conv_bn_silu_kernel(x_ref, w_ref, b_ref, o_ref):
    """1x1 Conv (matmul) + folded-BN bias + SiLU on one (TM, Cin) row tile.

    x: (TM, Cin) bf16, w: (Cin, Cout) bf16 (BN scale pre-folded), b: (1, Cout) f32.
    """
    y = jnp.dot(x_ref[...], w_ref[...], preferred_element_type=jnp.float32)
    y = y + b_ref[...]
    sig = pl.reciprocal(1.0 + jnp.exp(-y), approx=True)   # EUP exp + EUP rcp
    o_ref[...] = (y * sig).astype(o_ref.dtype)


def _maxpool_same(v, k):
    """k x k max pool, stride 1, pad k//2, implicit -inf padding.  v: (H, W, C)."""
    H, W, C = v.shape
    p = k // 2
    # Horizontal pass (W axis).
    pad_w = jnp.full((H, p, C), _NEG, v.dtype)
    vp = jnp.concatenate([pad_w, v, pad_w], axis=1)        # (H, W + 2p, C)
    h = vp[:, 0:W, :]
    for d in range(1, k):
        h = jnp.maximum(h, vp[:, d:d + W, :])
    # Vertical pass (H axis).
    pad_h = jnp.full((p, W, C), _NEG, v.dtype)
    hp = jnp.concatenate([pad_h, h, pad_h], axis=0)        # (H + 2p, W, C)
    o = hp[0:H]
    for d in range(1, k):
        o = jnp.maximum(o, hp[d:d + H])
    return o


def _sppf_tail_kernel(k, x_ref, w_ref, b_ref, o_ref):
    """Fused [maxpool x3 + concat + cv2(1x1 conv + BN + SiLU)] for one image.

    x: (1, H, W, C) bf16 (cv1 output), w: (4, C, Cout) bf16 (BN scale pre-folded,
    grouped by concat branch), b: (1, Cout) f32, o: (1, H, W, Cout) f32.
    y1/y2/y3 and the concat live entirely in VMEM/vregs — no HBM round trips.
    """
    x = x_ref[0]                                           # (H, W, C)
    H, W, C = x.shape
    Cout = o_ref.shape[-1]

    y1 = _maxpool_same(x, k)
    y2 = _maxpool_same(y1, k)
    y3 = _maxpool_same(y2, k)

    M = H * W
    acc = jnp.dot(x.reshape(M, C), w_ref[0], preferred_element_type=jnp.float32)
    acc = acc + jnp.dot(y1.reshape(M, C), w_ref[1], preferred_element_type=jnp.float32)
    acc = acc + jnp.dot(y2.reshape(M, C), w_ref[2], preferred_element_type=jnp.float32)
    acc = acc + jnp.dot(y3.reshape(M, C), w_ref[3], preferred_element_type=jnp.float32)

    y = acc + b_ref[...]
    sig = pl.reciprocal(1.0 + jnp.exp(-y), approx=True)
    o_ref[...] = (y * sig).reshape(1, H, W, Cout).astype(o_ref.dtype)


# ------------------------------ kernel wrappers -----------------------------


def conv1x1_bn_silu(x_nhwc, blk, tm=512, out_dtype=jnp.bfloat16):
    """1x1 Conv + folded BN + SiLU, tiled over M = N*H*W with a parallel grid."""
    N, H, W, Cin = x_nhwc.shape
    w_io = blk["w_oihw"][:, :, 0, 0].T                     # (Cin, Cout)
    Cout = w_io.shape[1]
    # Fold BN scale into the weights (bias-only epilogue in-kernel); bf16 MXU operands.
    w_f = (w_io * blk["scale"][None, :]).astype(jnp.bfloat16)
    bias = blk["bias"].reshape(1, Cout).astype(jnp.float32)

    M = N * H * W
    tm = min(tm, _round_up(M, 8))                          # tile multiple of 8 sublanes
    Mp = _round_up(M, tm)
    x2 = x_nhwc.reshape(M, Cin).astype(jnp.bfloat16)
    if Mp != M:
        x2 = jnp.pad(x2, ((0, Mp - M), (0, 0)))

    out = pl.pallas_call(
        _pw_conv_bn_silu_kernel,
        out_shape=jax.ShapeDtypeStruct((Mp, Cout), out_dtype),
        grid=(Mp // tm,),
        in_specs=[
            pl.BlockSpec((tm, Cin), lambda i: (i, 0)),     # pipelined row tiles
            pl.BlockSpec((Cin, Cout), lambda i: (0, 0)),   # weights stay resident
            pl.BlockSpec((1, Cout), lambda i: (0, 0)),
        ],
        out_specs=pl.BlockSpec((tm, Cout), lambda i: (i, 0)),
        compiler_params=pltpu.CompilerParams(dimension_semantics=("parallel",)),
    )(x2, w_f, bias)
    return out[:M].reshape(N, H, W, Cout)


def sppf_pool_concat_cv2(x_nhwc, blk, k=5):
    """Fused three max-pools + concat + cv2, one grid step per batch image."""
    N, H, W, C = x_nhwc.shape
    w_io = blk["w_oihw"][:, :, 0, 0].T                     # (4C, Cout)
    Cout = w_io.shape[1]
    # Fold BN scale, cast bf16, group by concat branch: (4, C, Cout).
    w_f = (w_io * blk["scale"][None, :]).astype(jnp.bfloat16).reshape(4, C, Cout)
    bias = blk["bias"].reshape(1, Cout).astype(jnp.float32)
    x_bf = x_nhwc.astype(jnp.bfloat16)

    return pl.pallas_call(
        functools.partial(_sppf_tail_kernel, k),
        out_shape=jax.ShapeDtypeStruct((N, H, W, Cout), jnp.float32),
        grid=(N,),
        in_specs=[
            pl.BlockSpec((1, H, W, C), lambda b: (b, 0, 0, 0)),
            pl.BlockSpec((4, C, Cout), lambda b: (0, 0, 0)),
            pl.BlockSpec((1, Cout), lambda b: (0, 0)),
        ],
        out_specs=pl.BlockSpec((1, H, W, Cout), lambda b: (b, 0, 0, 0)),
        compiler_params=pltpu.CompilerParams(dimension_semantics=("parallel",)),
    )(x_bf, w_f, bias)


# -------------------------------- SPPF forward ------------------------------


def sppf_forward(x_nchw, params, k=5, tm=512):
    """Pallas implementation of SPPF.forward (inference-mode BatchNorm)."""
    x = jnp.transpose(x_nchw, (0, 2, 3, 1))                # NCHW -> NHWC
    h = conv1x1_bn_silu(x, params["cv1"], tm=tm)           # cv1: c1 -> c1//2 (bf16 act)
    out = sppf_pool_concat_cv2(h, params["cv2"], k=k)      # fused pools+concat+cv2
    return jnp.transpose(out, (0, 3, 1, 2))                # NHWC -> NCHW


# --------------------------- deterministic params ---------------------------


def _init_conv_block(key, c_in, c_out, k=1):
    k1, k2, k3, k4, k5 = jax.random.split(key, 5)
    w = jax.random.normal(k1, (c_out, c_in, k, k), jnp.float32) * 0.1   # PyTorch OIHW
    gamma = jax.random.uniform(k2, (c_out,), jnp.float32, minval=0.8, maxval=1.2)
    beta = jax.random.normal(k3, (c_out,), jnp.float32) * 0.1
    mean = jax.random.normal(k4, (c_out,), jnp.float32) * 0.1
    var = jax.random.uniform(k5, (c_out,), jnp.float32, minval=0.5, maxval=1.5)
    eps = 1e-5                                             # nn.BatchNorm2d default
    scale = gamma / jnp.sqrt(var + eps)                    # fold eval-mode BN into affine
    bias = beta - mean * scale
    return {"w_oihw": w, "scale": scale, "bias": bias}


def init_sppf_params(key, c1, c2):
    c_ = c1 // 2
    k1, k2 = jax.random.split(key)
    return {
        "c_": c_,
        "cv1": _init_conv_block(k1, c1, c_, 1),
        "cv2": _init_conv_block(k2, 4 * c_, c2, 1),
    }


# ------------------------------- JAX reference ------------------------------


def _ref_conv1x1_bn_silu(x_nhwc, blk):
    w_io = blk["w_oihw"][:, :, 0, 0].T
    y = jnp.einsum("nhwc,cd->nhwd", x_nhwc, w_io)
    y = y * blk["scale"] + blk["bias"]
    return y * jax.nn.sigmoid(y)


def _ref_maxpool(x_nhwc, k=5):
    p = k // 2
    return jax.lax.reduce_window(
        x_nhwc, -jnp.inf, jax.lax.max,
        window_dimensions=(1, k, k, 1),
        window_strides=(1, 1, 1, 1),
        padding=((0, 0), (p, p), (p, p), (0, 0)))


def sppf_reference(x_nchw, params, k=5):
    x = jnp.transpose(x_nchw, (0, 2, 3, 1))
    h = _ref_conv1x1_bn_silu(x, params["cv1"])
    y1 = _ref_maxpool(h, k)
    y2 = _ref_maxpool(y1, k)
    y3 = _ref_maxpool(y2, k)
    cat = jnp.concatenate([h, y1, y2, y3], axis=-1)
    out = _ref_conv1x1_bn_silu(cat, params["cv2"])
    return jnp.transpose(out, (0, 3, 1, 2))


# ----------------------------------- main ------------------------------------


if __name__ == "__main__":
    key = jax.random.PRNGKey(0)
    k_x, k_p = jax.random.split(key)

    # Small SPPF config: c1=16 -> c_=8, c2=16, k=5 (module default).
    c1, c2, kk = 16, 16, 5
    N, H, W = 2, 32, 32                                    # M = 2048 -> 4 row tiles of 512

    params = init_sppf_params(k_p, c1, c2)
    x = jax.random.normal(k_x, (N, c1, H, W), jnp.float32)  # NCHW like PyTorch

    out = sppf_forward(x, params, k=kk)
    out = jax.block_until_ready(out)

    assert out.shape == (N, c2, H, W), out.shape

    ref = sppf_reference(x, params, k=kk)
    # bf16 MXU operands (f32 accumulation) -> compare against the f32 reference with a
    # tolerance that covers bf16 rounding.
    max_err = float(jnp.max(jnp.abs(out - ref)))
    assert jnp.allclose(out, ref, atol=3e-2, rtol=3e-2), f"mismatch vs reference (max abs err {max_err})"

    print("KERNEL_OK")
</pallas_src>

<mosaic_0001>
module attributes {stable_mosaic.version = 11 : i64} {
  func.func @_pw_conv_bn_silu_kernel(%arg0: i32, %arg1: memref<512x16xbf16, #tpu.memory_space<vmem>>, %arg2: memref<16x8xbf16, #tpu.memory_space<vmem>>, %arg3: memref<1x8xf32, #tpu.memory_space<vmem>>, %arg4: memref<512x8xbf16, #tpu.memory_space<vmem>>) attributes {dimension_semantics = [#tpu.dimension_semantics<parallel>], iteration_bounds = array<i64: 4>, scalar_prefetch = 0 : i64, scratch_operands = 0 : i64, tpu.core_type = #tpu.core_type<tc>, window_params = [{transform_indices = @transform_0, window_bounds = array<i64: 512, 16>}, {pipeline_mode = #tpu.pipeline_mode<synchronous>, transform_indices = @transform_1, window_bounds = array<i64: 16, 8>}, {pipeline_mode = #tpu.pipeline_mode<synchronous>, transform_indices = @transform_2, window_bounds = array<i64: 1, 8>}, {transform_indices = @transform_3, window_bounds = array<i64: 512, 8>}]} {
    %c0 = arith.constant 0 : index
    %c0_0 = arith.constant 0 : index
    %0 = vector.load %arg1[%c0, %c0_0] : memref<512x16xbf16, #tpu.memory_space<vmem>>, vector<512x16xbf16>
    %c0_1 = arith.constant 0 : index
    %c0_2 = arith.constant 0 : index
    %1 = vector.load %arg2[%c0_1, %c0_2] : memref<16x8xbf16, #tpu.memory_space<vmem>>, vector<16x8xbf16>
    %cst = arith.constant dense<0.000000e+00> : vector<512x8xf32>
    %2 = tpu.matmul %0, %1, %cst {dimension_numbers = #tpu.dot_dimension_numbers<[1], [0], [0], [1], [0, 0, 1, 1], [], []>} : vector<512x16xbf16>, vector<16x8xbf16>, vector<512x8xf32> -> vector<512x8xf32>
    %c0_3 = arith.constant 0 : index
    %c0_4 = arith.constant 0 : index
    %3 = vector.load %arg3[%c0_3, %c0_4] : memref<1x8xf32, #tpu.memory_space<vmem>>, vector<1x8xf32>
    %4 = vector.broadcast %3 : vector<1x8xf32> to vector<512x8xf32>
    %5 = arith.addf %2, %4 : vector<512x8xf32>
    %cst_5 = arith.constant 0.000000e+00 : f32
    %6 = vector.broadcast %cst_5 : f32 to vector<512x8xf32>
    %7 = arith.subf %6, %5 : vector<512x8xf32>
    %8 = math.exp %7 : vector<512x8xf32>
    %cst_6 = arith.constant 1.000000e+00 : f32
    %9 = vector.broadcast %cst_6 : f32 to vector<512x8xf32>
    %10 = arith.addf %9, %8 : vector<512x8xf32>
    %11 = tpu.reciprocal %10 {approx = true} : vector<512x8xf32> -> vector<512x8xf32>
    %12 = arith.mulf %5, %11 : vector<512x8xf32>
    %13 = arith.truncf %12 : vector<512x8xf32> to vector<512x8xbf16>
    %c0_7 = arith.constant 0 : index
    %c0_8 = arith.constant 0 : index
    %14 = vector.load %arg4[%c0_7, %c0_8] : memref<512x8xbf16, #tpu.memory_space<vmem>>, vector<512x8xbf16>
    tpu.vector_store %arg4[%c0_7, %c0_8], %13 {strides = array<i32>} : memref<512x8xbf16, #tpu.memory_space<vmem>>, vector<512x8xbf16>,
    return
  }
  func.func @transform_0(%arg0: i32) -> (i32, i32) {
    %c0_i32 = arith.constant 0 : i32
    %c0_i32_0 = arith.constant 0 : i32
    return %arg0, %c0_i32 : i32, i32
  }
  func.func @transform_1(%arg0: i32) -> (i32, i32) {
    %c0_i32 = arith.constant 0 : i32
    %c0_i32_0 = arith.constant 0 : i32
    %c0_i32_1 = arith.constant 0 : i32
    return %c0_i32, %c0_i32_0 : i32, i32
  }
  func.func @transform_2(%arg0: i32) -> (i32, i32) {
    %c0_i32 = arith.constant 0 : i32
    %c0_i32_0 = arith.constant 0 : i32
    %c0_i32_1 = arith.constant 0 : i32
    return %c0_i32, %c0_i32_0 : i32, i32
  }
  func.func @transform_3(%arg0: i32) -> (i32, i32) {
    %c0_i32 = arith.constant 0 : i32
    %c0_i32_0 = arith.constant 0 : i32
    return %arg0, %c0_i32 : i32, i32
  }
}

</mosaic_0001>

<bundles_post_ra>
// kernel: tpu_custom_call.1
= control target key start
LH: loop header
LB: loop body
LE: loop exit
PB: predicated region body
PF: predicated region fallthrough
CT: control target
= control target key end

     0   :  { %s2193_s12 = smov 0   ;;  %s2884_s0 = inlined_call_operand.vmem [shape: bf16[2048,16], index: 0, kind: input, shape index: {}]   ;;  %s2885_s1 = inlined_call_operand.vmem [shape: bf16[16,8], index: 1, kind: input, shape index: {}]   ;;  %s2886_s2 = inlined_call_operand.vmem [shape: f32[1,8], index: 2, kind: input, shape index: {}]   ;;  %s2887_s3 = inlined_call_operand.vmem [shape: bf16[2048,8], index: 3, kind: output, shape index: {}]  }
   0x1 LB: > { %s1561_s13 = sadd.s32 4294967295, %s2171_s12   ;;  %p1565_p0 = scmp.ge.s32.totalorder %s2171_s12, 1  ;;  %s2171_s12 = sphi %s2193_s12, %s13_s12  }
   0x2   : > { %p138_p1 = scmp.lt.s32.totalorder %s2171_s12, 5 }
   0x4   : > { %p139_p2 = pnand %p1565_p0, %p138_p1 }
   0x6   : > { %142 = sbr.rel (%p139_p2) target bundleno = 386 (0x182), region = 32 }
   0xd   : > { %v1875_v0 = vld [vmem:[%s2885_s1] sm:$0xff]   ;;  %s1566_s16 = sshll.u32 %s1561_s13, 6  ;;  %vm414_vm0 = vcmask 130048   ;;  %vm1440_vm1 = vcmask 60416  }
   0xe   : > { %p163_p3 = scmp.lt.s32.totalorder %s1566_s16, 255  ;;  %1799 = vmatprep.subr.bf16.mxu0 %v1875_v0  ;;  %1865 = vmatprep.subr.bf16.mxu1 %v1875_v0  ;;  %v2281_v33 = vld [vmem:[%s2886_s2] ss:$0 sm:$0xff] }
   0xf   : > { %1800 = vmatpush3.bf16.msra.mxu0 %v1875_v0  ;;  %1866 = vmatpush3.bf16.msra.mxu1 %v1875_v0 }
  0x10   : > { %s2905_s16 = smov (!%p163_p3, %s1566_s16), 255 }
  0x11   : > { %s1567_s17 = sshll.u32 %s2905_s16, 2 }
  0x12   : > { %s2212_s20 = scalar_lea.vmem %s2884_s0, %s1567_s17  ;;  %s2409_s25 = scalar_lea.vmem %s2887_s3, %s1567_s17 }
  0x13   : > { %v1876_v1 = vld [vmem:[%s2212_s20] sm:$0xff]   ;;  %v1878_v3 = vld [vmem:[%s2212_s20 + $0x8] sm:$0xff]   ;;  %v1880_v5 = vld [vmem:[%s2212_s20 + $0x10] sm:$0xff]  }
  0x14   : > { %v1877_v2 = vld [vmem:[%s2212_s20 + $0x80] sm:$0xff]   ;;  %1801 = vmatprep.mubr.msk.bf16.mxu0 %vm414_vm0, %v1876_v1  ;;  %v1879_v4 = vld [vmem:[%s2212_s20 + $0x88] sm:$0xff]   ;;  %v1881_v6 = vld [vmem:[%s2212_s20 + $0x90] sm:$0xff]  }
  0x15   : > { %1833 = vmatprep.mubr.msk.bf16.mxu1 %vm414_vm0, %v1877_v2  ;;  %1802 = vmatmul.mubr.msk.bf16.vlgmr.msra.gmra.mrb[0].mxu0 %vm414_vm0, %v1878_v3  ;;  %v1882_v7 = vld [vmem:[%s2212_s20 + $0x18] sm:$0xff]   ;;  %v1884_v9 = vld [vmem:[%s2212_s20 + $0x20] sm:$0xff]   ;;  %v1886_v11 = vld [vmem:[%s2212_s20 + $0x28] sm:$0xff]  }
  0x16   : > { %1834 = vmatmul.mubr.msk.bf16.vlgmr.msra.gmra.mrb[0].mxu1 %vm414_vm0, %v1879_v4  ;;  %1805 = vmatprep.mubr.msk.bf16.mxu0 %vm414_vm0, %v1880_v5  ;;  %v1883_v8 = vld [vmem:[%s2212_s20 + $0x98] sm:$0xff]   ;;  %v1885_v10 = vld [vmem:[%s2212_s20 + $0xa0] sm:$0xff]   ;;  %v1887_v12 = vld [vmem:[%s2212_s20 + $0xa8] sm:$0xff]  }
  0x17   : > { %1837 = vmatprep.mubr.msk.bf16.mxu1 %vm414_vm0, %v1881_v6  ;;  %v1888_v13 = vld [vmem:[%s2212_s20 + $0x30] sm:$0xff]   ;;  %v1890_v15 = vld [vmem:[%s2212_s20 + $0x38] sm:$0xff]   ;;  %v1892_v17 = vld [vmem:[%s2212_s20 + $0x40] sm:$0xff]  }
  0x18   : > { %v1889_v14 = vld [vmem:[%s2212_s20 + $0xb0] sm:$0xff]   ;;  %v1891_v16 = vld [vmem:[%s2212_s20 + $0xb8] sm:$0xff]   ;;  %v1893_v18 = vld [vmem:[%s2212_s20 + $0xc0] sm:$0xff]  }
  0x19   : > { %v1894_v19 = vld [vmem:[%s2212_s20 + $0x48] sm:$0xff]   ;;  %v1896_v21 = vld [vmem:[%s2212_s20 + $0x50] sm:$0xff]   ;;  %v1898_v23 = vld [vmem:[%s2212_s20 + $0x58] sm:$0xff]  }
  0x1a   : > { %v1895_v20 = vld [vmem:[%s2212_s20 + $0xc8] sm:$0xff]   ;;  %v1897_v22 = vld [vmem:[%s2212_s20 + $0xd0] sm:$0xff]   ;;  %v1899_v24 = vld [vmem:[%s2212_s20 + $0xd8] sm:$0xff]  }
  0x1b   : > { %v1900_v25 = vld [vmem:[%s2212_s20 + $0x60] sm:$0xff]   ;;  %v1902_v27 = vld [vmem:[%s2212_s20 + $0x68] sm:$0xff]   ;;  %v1904_v29 = vld [vmem:[%s2212_s20 + $0x70] sm:$0xff]  }
  0x1c   : > { %v1901_v26 = vld [vmem:[%s2212_s20 + $0xe0] sm:$0xff]   ;;  %v1903_v28 = vld [vmem:[%s2212_s20 + $0xe8] sm:$0xff]   ;;  %v1905_v30 = vld [vmem:[%s2212_s20 + $0xf0] sm:$0xff]  }
  0x1d   : > { %1806 = vmatmul.mubr.msk.bf16.gmra.mrb[4].mxu0 %vm414_vm0, %v1882_v7  ;;  %v1906_v31 = vld [vmem:[%s2212_s20 + $0x78] sm:$0xff]  }
  0x1e   : > { %1838 = vmatmul.mubr.msk.bf16.gmra.mrb[4].mxu1 %vm414_vm0, %v1883_v8  ;;  %1809 = vmatprep.mubr.msk.bf16.mxu0 %vm414_vm0, %v1884_v9  ;;  %v1907_v32 = vld [vmem:[%s2212_s20 + $0xf8] sm:$0xff]  }
  0x1f   : > { %1841 = vmatprep.mubr.msk.bf16.mxu1 %vm414_vm0, %v1885_v10 }
  0x25   : > { %1810 = vmatmul.mubr.msk.bf16.gmra.mrb[8].mxu0 %vm414_vm0, %v1886_v11 }
  0x26   : > { %1842 = vmatmul.mubr.msk.bf16.gmra.mrb[8].mxu1 %vm414_vm0, %v1887_v12  ;;  %1813 = vmatprep.mubr.msk.bf16.mxu0 %vm414_vm0, %v1888_v13 }
  0x27   : > { %1845 = vmatprep.mubr.msk.bf16.mxu1 %vm414_vm0, %v1889_v14 }
  0x2d   : > { %1814 = vmatmul.mubr.msk.bf16.gmra.mrb[12].mxu0 %vm414_vm0, %v1890_v15 }
  0x2e   : > { %1846 = vmatmul.mubr.msk.bf16.gmra.mrb[12].mxu1 %vm414_vm0, %v1891_v16  ;;  %1817 = vmatprep.mubr.msk.bf16.mxu0 %vm414_vm0, %v1892_v17 }
  0x2f   : > { %1849 = vmatprep.mubr.msk.bf16.mxu1 %vm414_vm0, %v1893_v18 }
  0x35   : > { %1818 = vmatmul.mubr.msk.bf16.gmra.mrb[16].mxu0 %vm414_vm0, %v1894_v19 }
  0x36   : > { %1850 = vmatmul.mubr.msk.bf16.gmra.mrb[16].mxu1 %vm414_vm0, %v1895_v20  ;;  %1821 = vmatprep.mubr.msk.bf16.mxu0 %vm414_vm0, %v1896_v21 }
  0x37   : > { %1853 = vmatprep.mubr.msk.bf16.mxu1 %vm414_vm0, %v1897_v22 }
  0x3d   : > { %1822 = vmatmul.mubr.msk.bf16.gmra.mrb[20].mxu0 %vm414_vm0, %v1898_v23 }
  0x3e   : > { %1854 = vmatmul.mubr.msk.bf16.gmra.mrb[20].mxu1 %vm414_vm0, %v1899_v24  ;;  %1825 = vmatprep.mubr.msk.bf16.mxu0 %vm414_vm0, %v1900_v25 }
  0x3f   : > { %1857 = vmatprep.mubr.msk.bf16.mxu1 %vm414_vm0, %v1901_v26 }
  0x45   : > { %1826 = vmatmul.mubr.msk.bf16.gmra.mrb[24].mxu0 %vm414_vm0, %v1902_v27 }
  0x46   : > { %1858 = vmatmul.mubr.msk.bf16.gmra.mrb[24].mxu1 %vm414_vm0, %v1903_v28  ;;  %1829 = vmatprep.mubr.msk.bf16.mxu0 %vm414_vm0, %v1904_v29 }
  0x47   : > { %1861 = vmatprep.mubr.msk.bf16.mxu1 %vm414_vm0, %v1905_v30 }
  0x4d   : > { %1830 = vmatmul.mubr.msk.bf16.gmra.mrb[28].mxu0 %vm414_vm0, %v1906_v31 }
  0x4e   : > { %1862 = vmatmul.mubr.msk.bf16.gmra.mrb[28].mxu1 %vm414_vm0, %v1907_v32 }
  0xe8   : > { %v1803_v34 = vpop.f32.mrb[0].mxu0 }
  0xe9   : > { %v2284_v35 = vadd.f32 %v1803_v34, %v2281_v33  ;;  %v1835_v36 = vpop.f32.mrb[0].mxu1  ;;  %v545_v37 = vpop.f32.mrb[1].mxu0 }
  0xea   : > { %v2287_v38 = vadd.f32 %v1835_v36, %v2281_v33  ;;  %v2290_v39 = vadd.f32 %v2281_v33, %v545_v37  ;;  %v673_v40 = vpop.f32.mrb[1].mxu1  ;;  %v1804_v41 = vpop.f32.mrb[2].mxu0 }
  0xeb   : > { %v802_v42 = vsub.f32 0.0, %v2284_v35  ;;  %v2294_v43 = vadd.f32 %v2281_v33, %v673_v40  ;;  %v2297_v44 = vadd.f32 %v1804_v41, %v2281_v33  ;;  %v1836_v45 = vpop.f32.mrb[2].mxu1  ;;  %v548_v46 = vpop.f32.mrb[3].mxu0 }
  0xec   : > { %v834_v47 = vsub.f32 0.0, %v2287_v38  ;;  %v800_v48 = vsub.f32 0.0, %v2290_v39  ;;  %v2302_v49 = vadd.f32 %v1836_v45, %v2281_v33  ;;  %v2305_v50 = vadd.f32 %v2281_v33, %v548_v46  ;;  %v676_v51 = vpop.f32.mrb[3].mxu1 }
  0xed   : > { %v868_v52 = vmul.f32 1.442695, %v802_v42  ;;  %v832_v53 = vsub.f32 0.0, %v2294_v43  ;;  %v803_v54 = vsub.f32 0.0, %v2297_v44  ;;  %v2310_v55 = vadd.f32 %v2281_v33, %v676_v51 }
  0xee   : > { %v932_v56 = vmul.f32 1.442695, %v834_v47  ;;  %v864_v57 = vmul.f32 1.442695, %v800_v48  ;;  %v835_v58 = vsub.f32 0.0, %v2302_v49  ;;  %v801_v59 = vsub.f32 0.0, %v2305_v50 }
  0xef   : > { %1908 = vpow2.f32 %v868_v52  ;;  %v928_v60 = vmul.f32 1.442695, %v832_v53  ;;  %v870_v61 = vmul.f32 1.442695, %v803_v54  ;;  %v833_v62 = vsub.f32 0.0, %v2310_v55 }
  0xf0   : > { %1910 = vpow2.f32 %v932_v56  ;;  %v934_v63 = vmul.f32 1.442695, %v835_v58  ;;  %v1807_v0 = vpop.f32.mrb[4].mxu0  ;;  %v866_v1 = vmul.f32 1.442695, %v801_v59 }
  0xf1   : > { %1912 = vpow2.f32 %v864_v57  ;;  %v2316_v2 = vadd.f32 %v1807_v0, %v2281_v33  ;;  %v1839_v3 = vpop.f32.mrb[4].mxu1  ;;  %v561_v4 = vpop.f32.mrb[5].mxu0  ;;  %v930_v5 = vmul.f32 1.442695, %v833_v62 }
  0xf2   : > { %1914 = vpow2.f32 %v928_v60  ;;  %v2319_v6 = vadd.f32 %v1839_v3, %v2281_v33  ;;  %v2322_v7 = vadd.f32 %v2281_v33, %v561_v4  ;;  %v689_v8 = vpop.f32.mrb[5].mxu1  ;;  %v1808_v9 = vpop.f32.mrb[6].mxu0 }
  0xf3   : > { %1916 = vpow2.f32 %v870_v61  ;;  %v806_v10 = vsub.f32 0.0, %v2316_v2  ;;  %v2326_v11 = vadd.f32 %v2281_v33, %v689_v8  ;;  %v2329_v12 = vadd.f32 %v1808_v9, %v2281_v33  ;;  %v1840_v13 = vpop.f32.mrb[6].mxu1  ;;  %v564_v14 = vpop.f32.mrb[7].mxu0 }
  0xf4   : > { %1918 = vpow2.f32 %v934_v63  ;;  %v838_v15 = vsub.f32 0.0, %v2319_v6  ;;  %v804_v16 = vsub.f32 0.0, %v2322_v7  ;;  %v2334_v17 = vadd.f32 %v1840_v13, %v2281_v33  ;;  %v692_v18 = vpop.f32.mrb[7].mxu1 }
  0xf5   : > { %1920 = vpow2.f32 %v866_v1  ;;  %v876_v19 = vmul.f32 1.442695, %v806_v10  ;;  %v836_v20 = vsub.f32 0.0, %v2326_v11  ;;  %v807_v21 = vsub.f32 0.0, %v2329_v12 }
  0xf6   : > { %1922 = vpow2.f32 %v930_v5  ;;  %v940_v22 = vmul.f32 1.442695, %v838_v15  ;;  %v872_v23 = vmul.f32 1.442695, %v804_v16  ;;  %v839_v26 = vsub.f32 0.0, %v2334_v17 }
  0xf7   : > { %1924 = vpow2.f32 %v876_v19  ;;  %v936_v24 = vmul.f32 1.442695, %v836_v20  ;;  %v878_v25 = vmul.f32 1.442695, %v807_v21  ;;  %v2340_v27 = vadd.f32 %v2281_v33, %v564_v14 }
  0xf8   : > { %1926 = vpow2.f32 %v940_v22  ;;  %v1811_v28 = vpop.f32.mrb[8].mxu0  ;;  %v2343_v30 = vadd.f32 %v2281_v33, %v692_v18  ;;  %v2351_v53 = vmul.f32 1.442695, %v839_v26 }
  0xf9   : > { %v1909_v29 = vpop.eup %1908  ;;  %1928 = vpow2.f32 %v872_v23  ;;  %v1843_v31 = vpop.f32.mrb[8].mxu1  ;;  %v2346_v37 = vadd.f32 %v1811_v28, %v2281_v33  ;;  %v805_v54 = vsub.f32 0.0, %v2340_v27 }
  0xfa   : > { %v577_v32 = vpop.f32.mrb[9].mxu0  ;;  %v1911_v34 = vpop.eup %1910  ;;  %v994_v36 = vadd.f32 1.0, %v1909_v29  ;;  %1930 = vpow2.f32 %v936_v24  ;;  %v2349_v46 = vadd.f32 %v1843_v31, %v2281_v33  ;;  %v837_v59 = vsub.f32 0.0, %v2343_v30 }
  0xfb   : > { %v705_v40 = vpop.f32.mrb[9].mxu1  ;;  %v1812_v41 = vpop.f32.mrb[10].mxu0  ;;  %v1026_v45 = vadd.f32 1.0, %v1911_v34  ;;  %1932 = vpow2.f32 %v878_v25  ;;  %v2356_v60 = vadd.f32 %v2281_v33, %v577_v32  ;;  %v810_v63 = vsub.f32 0.0, %v2346_v37 }
  0xfc   : > { %v1913_v42 = vpop.eup %1912  ;;  %v1844_v47 = vpop.f32.mrb[10].mxu1  ;;  %1934 = vrcp.f32 %v994_v36  ;;  %v2360_v0 = vadd.f32 %v2281_v33, %v705_v40  ;;  %v842_v4 = vsub.f32 0.0, %v2349_v46  ;;  %v2364_v5 = vadd.f32 %v1812_v41, %v2281_v33 }
  0xfd   : > { %v580_v48 = vpop.f32.mrb[11].mxu0  ;;  %v1915_v51 = vpop.eup %1914  ;;  %v992_v52 = vadd.f32 1.0, %v1913_v42  ;;  %1936 = vrcp.f32 %v1026_v45  ;;  %v874_v10 = vmul.f32 1.442695, %v805_v54  ;;  %v2367_v13 = vadd.f32 %v1844_v47, %v2281_v33 }
  0xfe   : > { %v708_v56 = vpop.f32.mrb[11].mxu1  ;;  %v1917_v57 = vpop.eup %1916  ;;  %v1024_v58 = vadd.f32 1.0, %v1915_v51  ;;  %v2369_v18 = vmul.f32 1.442695, %v837_v59  ;;  %v808_v19 = vsub.f32 0.0, %v2356_v60  ;;  %v840_v25 = vsub.f32 0.0, %v2360_v0 }
  0xff   : > { %v1919_v61 = vpop.eup %1918  ;;  %1938 = vrcp.f32 %v992_v52  ;;  %v995_v62 = vadd.f32 1.0, %v1917_v57  ;;  %v2374_v24 = vmul.f32 1.442695, %v810_v63  ;;  %v2381_v32 = vmul.f32 1.442695, %v842_v4 }
 0x100   : > { %v1921_v1 = vpop.eup %1920  ;;  %1940 = vrcp.f32 %v1024_v58  ;;  %v1027_v3 = vadd.f32 1.0, %v1919_v61  ;;  %v1815_v14 = vpop.f32.mrb[12].mxu0  ;;  %v811_v34 = vsub.f32 0.0, %v2364_v5  ;;  %v843_v45 = vsub.f32 0.0, %v2367_v13 }
 0x101   : > { %v1923_v8 = vpop.eup %1922  ;;  %1942 = vrcp.f32 %v995_v62  ;;  %v993_v9 = vadd.f32 1.0, %v1921_v1  ;;  %v1847_v20 = vpop.f32.mrb[12].mxu1  ;;  %v2390_v47 = vadd.f32 %v2281_v33, %v580_v48  ;;  %v880_v57 = vmul.f32 1.442695, %v808_v19 }
 0x102   : > { %v1925_v15 = vpop.eup %1924  ;;  %1944 = vrcp.f32 %v1027_v3  ;;  %v1025_v16 = vadd.f32 1.0, %v1923_v8  ;;  %v2372_v21 = vpop.f32.mrb[13].mxu0  ;;  %v2395_v58 = vadd.f32 %v2281_v33, %v708_v56  ;;  %v944_v62 = vmul.f32 1.442695, %v840_v25 }
 0x103   : > { %v1927_v22 = vpop.eup %1926  ;;  %1946 = vrcp.f32 %v993_v9  ;;  %v998_v23 = vadd.f32 1.0, %v1925_v15  ;;  %v2377_v26 = vpop.f32.mrb[13].mxu1  ;;  %v2398_v63 = vadd.f32 %v1815_v14, %v2281_v33  ;;  %v886_v3 = vmul.f32 1.442695, %v811_v34 }
 0x104   : > { %v2379_v28 = vpop.f32.mrb[14].mxu0  ;;  %v1929_v29 = vpop.eup %1928  ;;  %1948 = vrcp.f32 %v1025_v16  ;;  %v1030_v31 = vadd.f32 1.0, %v1927_v22  ;;  %v2402_v4 = vadd.f32 %v1847_v20, %v2281_v33  ;;  %v950_v9 = vmul.f32 1.442695, %v843_v45 }
 0x105   : > { %v2384_v36 = vpop.f32.mrb[14].mxu1  ;;  %v2386_v40 = vpop.f32.mrb[15].mxu0  ;;  %1950 = vrcp.f32 %v998_v23  ;;  %v996_v42 = vadd.f32 1.0, %v1929_v29  ;;  %v809_v14 = vsub.f32 0.0, %v2390_v47  ;;  %v841_v20 = vsub.f32 0.0, %v2395_v58 }
 0x106   : > { %v1931_v41 = vpop.eup %1930  ;;  %v2392_v51 = vpop.f32.mrb[15].mxu1  ;;  %1952 = vrcp.f32 %v1030_v31  ;;  %v814_v31 = vsub.f32 0.0, %v2398_v63  ;;  %v846_v45 = vsub.f32 0.0, %v2402_v4 }
 0x107   : > { %v1933_v52 = vpop.eup %1932  ;;  %v1028_v54 = vadd.f32 1.0, %v1931_v41  ;;  %1954 = vrcp.f32 %v996_v42 }
 0x108   : > { %v1935_v59 = vpop.eup %1934  ;;  %v999_v61 = vadd.f32 1.0, %v1933_v52  ;;  %v2413_v15 = vpop.f32.mrb[16].mxu0 }
 0x109   : > { %v1937_v1 = vpop.eup %1936  ;;  %v1122_v48 = vmul.f32 %v1935_v59, %v2284_v35  ;;  %1956 = vrcp.f32 %v1028_v54  ;;  %v2418_v22 = vpop.f32.mrb[16].mxu1 }
 0x10a   : > { %v1939_v8 = vpop.eup %1938  ;;  %v1154_v56 = vmul.f32 %v1937_v1, %v2287_v38  ;;  %1958 = vrcp.f32 %v999_v61  ;;  %v2420_v23 = vpop.f32.mrb[17].mxu0  ;;  %v882_v61 = vmul.f32 1.442695, %v809_v14  ;;  %v892_v14 = vmul.f32 1.442695, %v814_v31 }
 0x10b   : > { %v1941_v35 = vpop.eup %1940  ;;  %v1704_v16 = vpack.c.bf16 %v1122_v48, %v1122_v48  ;;  %v1120_v19 = vmul.f32 %v1939_v8, %v2290_v39  ;;  %1960 = vpow2.f32 %v2351_v53  ;;  %v2424_v34 = vpop.f32.mrb[17].mxu1  ;;  %v946_v8 = vmul.f32 1.442695, %v841_v20 }
 0x10c   : > { %v1943_v38 = vpop.eup %1942  ;;  %v1736_v25 = vpack.c.bf16 %v1154_v56, %v1154_v56  ;;  %v1152_v29 = vmul.f32 %v1941_v35, %v2294_v43  ;;  %1962 = vpow2.f32 %v874_v10  ;;  %v2426_v41 = vpop.f32.mrb[18].mxu0 }
 0x10d   : > { %v1945_v39 = vpop.eup %1944  ;;  %1443 = vst.msk [vmem:[%s2409_s25 + $0x8] sm:$0xf] %vm1440_vm1, %v1704_v16  ;;  %v1702_v53 = vpack.c.bf16 %v1120_v19, %v1120_v19  ;;  %v1123_v42 = vmul.f32 %v1943_v38, %v2297_v44  ;;  %1964 = vpow2.f32 %v2369_v18  ;;  %v2433_v52 = vpop.f32.mrb[18].mxu1 }
 0x10e   : > { %v2435_v43 = vpop.f32.mrb[19].mxu0  ;;  %v1947_v10 = vpop.eup %1946  ;;  %1475 = vst.msk [vmem:[%s2409_s25 + $0x88] sm:$0xf] %vm1440_vm1, %v1736_v25  ;;  %v1734_v54 = vpack.c.bf16 %v1152_v29, %v1152_v29  ;;  %v1155_v59 = vmul.f32 %v1945_v39, %v2302_v49  ;;  %1966 = vpow2.f32 %v2374_v24  ;;  %v2467_v29 = vadd.f32 %v2281_v33, %v2377_v26 }
 0x10f   : > { %v2441_v44 = vpop.f32.mrb[19].mxu1  ;;  %v1949_v18 = vpop.eup %1948  ;;  %1441 = vst.msk [vmem:[%s2409_s25] sm:$0xf] %vm1440_vm1, %v1702_v53  ;;  %v1705_v1 = vpack.c.bf16 %v1123_v42, %v1123_v42  ;;  %v1121_v48 = vmul.f32 %v1947_v10, %v2305_v50  ;;  %1968 = vpow2.f32 %v2381_v32  ;;  %v956_v50 = vmul.f32 1.442695, %v846_v45 }
 0x110   : > { %v1951_v56 = vpop.eup %1950  ;;  %1473 = vst.msk [vmem:[%s2409_s25 + $0x80] sm:$0xf] %vm1440_vm1, %v1734_v54  ;;  %v1737_v49 = vpack.c.bf16 %v1155_v59, %v1155_v59  ;;  %v1153_v24 = vmul.f32 %v1949_v18, %v2310_v55  ;;  %1970 = vpow2.f32 %v880_v57  ;;  %v2458_v55 = vadd.f32 %v2281_v33, %v2372_v21  ;;  %v2460_v57 = vpop.f32.mrb[20].mxu0 }
 0x111   : > { %v1953_v35 = vpop.eup %1952  ;;  %1444 = vst.msk [vmem:[%s2409_s25 + $0xc] sm:$0xf] %vm1440_vm1, %v1705_v1  ;;  %v1703_v16 = vpack.c.bf16 %v1121_v48, %v1121_v48  ;;  %v1126_v19 = vmul.f32 %v1951_v56, %v2316_v2  ;;  %1972 = vpow2.f32 %v944_v62 }
 0x112   : > { %v1955_v38 = vpop.eup %1954  ;;  %1476 = vst.msk [vmem:[%s2409_s25 + $0x8c] sm:$0xf] %vm1440_vm1, %v1737_v49  ;;  %v1735_v32 = vpack.c.bf16 %v1153_v24, %v1153_v24  ;;  %v1158_v20 = vmul.f32 %v1953_v35, %v2319_v6  ;;  %1974 = vpow2.f32 %v886_v3  ;;  %v2469_v6 = vpop.f32.mrb[20].mxu1  ;;  %v812_v18 = vsub.f32 0.0, %v2458_v55 }
 0x113   : > { %v1957_v25 = vpop.eup %1956  ;;  %1442 = vst.msk [vmem:[%s2409_s25 + $0x4] sm:$0xf] %vm1440_vm1, %v1703_v16  ;;  %v1708_v2 = vpack.c.bf16 %v1126_v19, %v1126_v19  ;;  %v1124_v62 = vmul.f32 %v1955_v38, %v2322_v7  ;;  %1976 = vpow2.f32 %v950_v9  ;;  %v2471_v3 = vpop.f32.mrb[21].mxu0  ;;  %v2478_v7 = vadd.f32 %v2379_v28, %v2281_v33 }
 0x114   : > { %v1959_v21 = vpop.eup %1958  ;;  %1474 = vst.msk [vmem:[%s2409_s25 + $0x84] sm:$0xf] %vm1440_vm1, %v1735_v32  ;;  %v1740_v31 = vpack.c.bf16 %v1158_v20, %v1158_v20  ;;  %v1156_v39 = vmul.f32 %v1957_v25, %v2326_v11  ;;  %1978 = vpow2.f32 %v882_v61  ;;  %v2480_v9 = vpop.f32.mrb[21].mxu1  ;;  %v2489_v11 = vadd.f32 %v2384_v36, %v2281_v33 }
 0x115   : > { %v2482_v26 = vpop.f32.mrb[22].mxu0  ;;  %v1961_v53 = vpop.eup %1960  ;;  %1447 = vst.msk [vmem:[%s2409_s25 + $0x18] sm:$0xf] %vm1440_vm1, %v1708_v2  ;;  %v1706_v42 = vpack.c.bf16 %v1124_v62, %v1124_v62  ;;  %v1127_v45 = vmul.f32 %v1959_v21, %v2329_v12  ;;  %1980 = vpow2.f32 %v946_v8  ;;  %v844_v8 = vsub.f32 0.0, %v2467_v29 }
 0x116   : > { %v2491_v10 = vpop.f32.mrb[22].mxu1  ;;  %v2493_v28 = vpop.f32.mrb[23].mxu0  ;;  %1479 = vst.msk [vmem:[%s2409_s25 + $0x98] sm:$0xf] %vm1440_vm1, %v1740_v31  ;;  %v1738_v59 = vpack.c.bf16 %v1156_v39, %v1156_v39  ;;  %v1031_v61 = vadd.f32 1.0, %v1961_v53  ;;  %1982 = vpow2.f32 %v892_v14  ;;  %v815_v24 = vsub.f32 0.0, %v2478_v7 }
 0x117   : > { %v1963_v54 = vpop.eup %1962  ;;  %v2498_v12 = vpop.f32.mrb[23].mxu1  ;;  %1445 = vst.msk [vmem:[%s2409_s25 + $0x10] sm:$0xf] %vm1440_vm1, %v1706_v42  ;;  %v1709_v36 = vpack.c.bf16 %v1127_v45, %v1127_v45  ;;  %1984 = vpow2.f32 %v956_v50  ;;  %v2508_v14 = vadd.f32 %v2281_v33, %v2386_v40  ;;  %v847_v19 = vsub.f32 0.0, %v2489_v11 }
 0x118   : > { %v1965_v1 = vpop.eup %1964  ;;  %v997_v48 = vadd.f32 1.0, %v1963_v54  ;;  %1477 = vst.msk [vmem:[%s2409_s25 + $0x90] sm:$0xf] %vm1440_vm1, %v1738_v59  ;;  %1986 = vrcp.f32 %v1031_v61  ;;  %v2515_v50 = vadd.f32 %v2281_v33, %v2392_v51  ;;  %v2517_v20 = vmul.f32 1.442695, %v812_v18  ;;  %v2523_v25 = vpop.f32.mrb[24].mxu0 }
 0x119   : > { %v1967_v56 = vpop.eup %1966  ;;  %v1029_v49 = vadd.f32 1.0, %v1965_v1  ;;  %1448 = vst.msk [vmem:[%s2409_s25 + $0x1c] sm:$0xf] %vm1440_vm1, %v1709_v36  ;;  %v2521_v40 = vadd.f32 %v2413_v15, %v2281_v33  ;;  %v2525_v21 = vmul.f32 1.442695, %v844_v8  ;;  %v2529_v51 = vadd.f32 %v2418_v22, %v2281_v33  ;;  %v2531_v31 = vpop.f32.mrb[24].mxu1 }
 0x11a   : > { %v1969_v35 = vpop.eup %1968  ;;  %1988 = vrcp.f32 %v997_v48  ;;  %v1002_v16 = vadd.f32 1.0, %v1967_v56  ;;  %v2533_v39 = vpop.f32.mrb[25].mxu0  ;;  %v2535_v15 = vmul.f32 1.442695, %v815_v24  ;;  %v813_v45 = vsub.f32 0.0, %v2508_v14 }
 0x11b   : > { %v1971_v38 = vpop.eup %1970  ;;  %1990 = vrcp.f32 %v1029_v49  ;;  %v1034_v32 = vadd.f32 1.0, %v1969_v35  ;;  %v2538_v54 = vpop.f32.mrb[25].mxu1  ;;  %v2542_v22 = vmul.f32 1.442695, %v847_v19  ;;  %v845_v1 = vsub.f32 0.0, %v2515_v50 }
 0x11c   : > { %v1973_v2 = vpop.eup %1972  ;;  %1992 = vrcp.f32 %v1002_v16  ;;  %v1000_v62 = vadd.f32 1.0, %v1971_v38  ;;  %v2540_v59 = vpop.f32.mrb[26].mxu0  ;;  %v818_v56 = vsub.f32 0.0, %v2521_v40  ;;  %v2550_v49 = vadd.f32 %v2281_v33, %v2420_v23 }
 0x11d   : > { %v1975_v53 = vpop.eup %1974  ;;  %1994 = vrcp.f32 %v1034_v32  ;;  %v1032_v42 = vadd.f32 1.0, %v1973_v2  ;;  %v2545_v36 = vpop.f32.mrb[26].mxu1  ;;  %v850_v38 = vsub.f32 0.0, %v2529_v51  ;;  %v2559_v32 = vadd.f32 %v2281_v33, %v2424_v34 }
 0x11e   : > { %v1977_v61 = vpop.eup %1976  ;;  %1996 = vrcp.f32 %v1000_v62  ;;  %v1003_v18 = vadd.f32 1.0, %v1975_v53  ;;  %2888 = vst [vmem:[#allocation2_spill] sm:$0xff] %v2545_v36  ;;  %v2552_v24 = vpop.f32.mrb[27].mxu0  ;;  %v890_v53 = vmul.f32 1.442695, %v813_v45  ;;  %v2563_v23 = vadd.f32 %v2426_v41, %v2281_v33 }
 0x11f   : > { %v1979_v48 = vpop.eup %1978  ;;  %1998 = vrcp.f32 %v1032_v42  ;;  %v1035_v8 = vadd.f32 1.0, %v1977_v61  ;;  %2889 = vst [vmem:[#allocation3_spill] sm:$0xff] %v2552_v24  ;;  %v2554_v35 = vpop.f32.mrb[27].mxu1  ;;  %v900_v36 = vmul.f32 1.442695, %v818_v56  ;;  %v2568_v34 = vadd.f32 %v2433_v52, %v2281_v33 }
 0x120   : > { %2890 = vst [vmem:[#allocation4_spill] sm:$0xff] %v2554_v35  ;;  %v1981_v16 = vpop.eup %1980  ;;  %2000 = vrcp.f32 %v1003_v18  ;;  %v1001_v19 = vadd.f32 1.0, %v1979_v48  ;;  %v954_v35 = vmul.f32 1.442695, %v845_v1  ;;  %v816_v18 = vsub.f32 0.0, %v2550_v49 }
 0x121   : > { %v1983_v2 = vpop.eup %1982  ;;  %2002 = vrcp.f32 %v1035_v8  ;;  %v1033_v62 = vadd.f32 1.0, %v1981_v16  ;;  %v2570_v8 = vpop.f32.mrb[28].mxu0  ;;  %v964_v16 = vmul.f32 1.442695, %v850_v38  ;;  %v819_v52 = vsub.f32 0.0, %v2563_v23 }
 0x122   : > { %v1985_v42 = vpop.eup %1984  ;;  %2004 = vrcp.f32 %v1001_v19  ;;  %v1006_v61 = vadd.f32 1.0, %v1983_v2  ;;  %2891 = vst [vmem:[#allocation5_spill] sm:$0xff] %v2570_v8  ;;  %v848_v19 = vsub.f32 0.0, %v2559_v32  ;;  %v2574_v1 = vpop.f32.mrb[28].mxu1 }
 0x123   : > { %v1987_v48 = vpop.eup %1986  ;;  %2006 = vrcp.f32 %v1033_v62  ;;  %v1038_v24 = vadd.f32 1.0, %v1985_v42  ;;  %2892 = vst [vmem:[#allocation6_spill] sm:$0xff] %v2574_v1  ;;  %v2576_v2 = vpop.f32.mrb[29].mxu0  ;;  %v2582_v42 = vadd.f32 %v2281_v33, %v2435_v43 }
 0x124   : > { %v1989_v45 = vpop.eup %1988  ;;  %v1159_v41 = vmul.f32 %v1987_v48, %v2334_v17  ;;  %2008 = vrcp.f32 %v1006_v61  ;;  %2893 = vst [vmem:[#allocation7_spill] sm:$0xff] %v2576_v2  ;;  %v2584_v8 = vpop.f32.mrb[29].mxu1  ;;  %v896_v2 = vmul.f32 1.442695, %v816_v18 }
 0x125   : > { %v1991_v62 = vpop.eup %1990  ;;  %v1125_v56 = vmul.f32 %v1989_v45, %v2340_v27  ;;  %2010 = vrcp.f32 %v1038_v24  ;;  %v2586_v17 = vpop.f32.mrb[30].mxu0 }
 0x126   : > { %2894 = vst [vmem:[#allocation8_spill] sm:$0xff] %v2586_v17  ;;  %v1993_v38 = vpop.eup %1992  ;;  %v1741_v61 = vpack.c.bf16 %v1159_v41, %v1159_v41  ;;  %v1157_v48 = vmul.f32 %v1991_v62, %v2343_v30  ;;  %2012 = vpow2.f32 %v2517_v20  ;;  %v2590_v27 = vpop.f32.mrb[30].mxu1  ;;  %v851_v17 = vsub.f32 0.0, %v2568_v34 }
 0x127   : > { %v2592_v24 = vpop.f32.mrb[31].mxu0  ;;  %v1995_v45 = vpop.eup %1994  ;;  %v1707_v43 = vpack.c.bf16 %v1125_v56, %v1125_v56  ;;  %v1130_v1 = vmul.f32 %v1993_v38, %v2346_v37  ;;  %2014 = vpow2.f32 %v2525_v21  ;;  %v960_v62 = vmul.f32 1.442695, %v848_v19 }
 0x128   : > { %v2597_v41 = vpop.f32.mrb[31].mxu1  ;;  %v1997_v30 = vpop.eup %1996  ;;  %1480 = vst.msk [vmem:[%s2409_s25 + $0x9c] sm:$0xf] %vm1440_vm1, %v1741_v61  ;;  %v1739_v20 = vpack.c.bf16 %v1157_v48, %v1157_v48  ;;  %v1162_v18 = vmul.f32 %v1995_v45, %v2349_v46  ;;  %2016 = vpow2.f32 %v2535_v15  ;;  %v817_v38 = vsub.f32 0.0, %v2582_v42 }
 0x129   : > { %2895 = vst [vmem:[#allocation9_spill] sm:$0xff] %v2597_v41  ;;  %v1999_v56 = vpop.eup %1998  ;;  %1446 = vst.msk [vmem:[%s2409_s25 + $0x14] sm:$0xf] %vm1440_vm1, %v1707_v43  ;;  %v1712_v37 = vpack.c.bf16 %v1130_v1, %v1130_v1  ;;  %v1128_v21 = vmul.f32 %v1997_v30, %v2356_v60  ;;  %2018 = vpow2.f32 %v2542_v22  ;;  %v902_v15 = vmul.f32 1.442695, %v819_v52 }
 0x12a   : > { %v2001_v41 = vpop.eup %2000  ;;  %1478 = vst.msk [vmem:[%s2409_s25 + $0x94] sm:$0xf] %vm1440_vm1, %v1739_v20  ;;  %v1744_v61 = vpack.c.bf16 %v1162_v18, %v1162_v18  ;;  %v1160_v46 = vmul.f32 %v1999_v56, %v2360_v0  ;;  %2020 = vpow2.f32 %v890_v53  ;;  %v966_v22 = vmul.f32 1.442695, %v851_v17 }
 0x12b   : > { %v2003_v19 = vpop.eup %2002  ;;  %1451 = vst.msk [vmem:[%s2409_s25 + $0x28] sm:$0xf] %vm1440_vm1, %v1712_v37  ;;  %v1710_v1 = vpack.c.bf16 %v1128_v21, %v1128_v21  ;;  %v1131_v60 = vmul.f32 %v2001_v41, %v2364_v5  ;;  %2022 = vpow2.f32 %v954_v35  ;;  %v2619_v0 = vadd.f32 %v2281_v33, %v2441_v44 }
 0x12c   : > { %v2005_v48 = vpop.eup %2004  ;;  %1483 = vst.msk [vmem:[%s2409_s25 + $0xa8] sm:$0xf] %vm1440_vm1, %v1744_v61  ;;  %v1742_v45 = vpack.c.bf16 %v1160_v46, %v1160_v46  ;;  %v1163_v43 = vmul.f32 %v2003_v19, %v2367_v13  ;;  %2024 = vpow2.f32 %v900_v36  ;;  %v898_v35 = vmul.f32 1.442695, %v817_v38 }
 0x12d   : > { %v2007_v53 = vpop.eup %2006  ;;  %1449 = vst.msk [vmem:[%s2409_s25 + $0x20] sm:$0xf] %vm1440_vm1, %v1710_v1  ;;  %v1713_v52 = vpack.c.bf16 %v1131_v60, %v1131_v60  ;;  %v1129_v5 = vmul.f32 %v2005_v48, %v2390_v47  ;;  %2026 = vpow2.f32 %v964_v16  ;;  %v2629_v44 = vadd.f32 %v2460_v57, %v2281_v33 }
 0x12e   : > { %v2009_v17 = vpop.eup %2008  ;;  %1481 = vst.msk [vmem:[%s2409_s25 + $0xa0] sm:$0xf] %vm1440_vm1, %v1742_v45  ;;  %v1745_v41 = vpack.c.bf16 %v1163_v43, %v1163_v43  ;;  %v1161_v13 = vmul.f32 %v2007_v53, %v2395_v58  ;;  %2028 = vpow2.f32 %v896_v2  ;;  %v849_v58 = vsub.f32 0.0, %v2619_v0 }
 0x12f   : > { %v2011_v36 = vpop.eup %2010  ;;  %1452 = vst.msk [vmem:[%s2409_s25 + $0x2c] sm:$0xf] %vm1440_vm1, %v1713_v52  ;;  %v1711_v30 = vpack.c.bf16 %v1129_v5, %v1129_v5  ;;  %v1134_v47 = vmul.f32 %v2009_v17, %v2398_v63  ;;  %2030 = vpow2.f32 %v960_v62  ;;  %v2642_v63 = vadd.f32 %v2469_v6, %v2281_v33 }
 0x130   : > { %v2013_v16 = vpop.eup %2012  ;;  %1484 = vst.msk [vmem:[%s2409_s25 + $0xac] sm:$0xf] %vm1440_vm1, %v1745_v41  ;;  %v1743_v20 = vpack.c.bf16 %v1161_v13, %v1161_v13  ;;  %v1166_v18 = vmul.f32 %v2011_v36, %v2402_v4  ;;  %2032 = vpow2.f32 %v902_v15  ;;  %v822_v21 = vsub.f32 0.0, %v2629_v44 }
 0x131   : > { %v2015_v57 = vpop.eup %2014  ;;  %1450 = vst.msk [vmem:[%s2409_s25 + $0x24] sm:$0xf] %vm1440_vm1, %v1711_v30  ;;  %v1716_v2 = vpack.c.bf16 %v1134_v47, %v1134_v47  ;;  %v1004_v56 = vadd.f32 1.0, %v2013_v16  ;;  %2034 = vpow2.f32 %v966_v22  ;;  %v2651_v46 = vadd.f32 %v2281_v33, %v2471_v3 }
 0x132   : > { %v2017_v62 = vpop.eup %2016  ;;  %1482 = vst.msk [vmem:[%s2409_s25 + $0xa4] sm:$0xf] %vm1440_vm1, %v1743_v20  ;;  %v1748_v37 = vpack.c.bf16 %v1166_v18, %v1166_v18  ;;  %v1036_v4 = vadd.f32 1.0, %v2015_v57  ;;  %2036 = vpow2.f32 %v898_v35  ;;  %v2657_v19 = vadd.f32 %v2281_v33, %v2480_v9 }
 0x133   : > { %v2019_v38 = vpop.eup %2018  ;;  %1455 = vst.msk [vmem:[%s2409_s25 + $0x38] sm:$0xf] %vm1440_vm1, %v1716_v2  ;;  %2038 = vrcp.f32 %v1004_v56  ;;  %v1007_v61 = vadd.f32 1.0, %v2017_v62  ;;  %v2661_v1 = vadd.f32 %v2482_v26, %v2281_v33  ;;  %v962_v48 = vmul.f32 1.442695, %v849_v58 }
 0x134   : > { %v2021_v15 = vpop.eup %2020  ;;  %1487 = vst.msk [vmem:[%s2409_s25 + $0xb8] sm:$0xf] %vm1440_vm1, %v1748_v37  ;;  %2040 = vrcp.f32 %v1036_v4  ;;  %v1039_v6 = vadd.f32 1.0, %v2019_v38  ;;  %v2665_v3 = vadd.f32 %v2491_v10, %v2281_v33  ;;  %v908_v53 = vmul.f32 1.442695, %v822_v21 }
 0x135   : > { %v2023_v60 = vpop.eup %2022  ;;  %2042 = vrcp.f32 %v1007_v61  ;;  %v1005_v22 = vadd.f32 1.0, %v2021_v15  ;;  %v854_v52 = vsub.f32 0.0, %v2642_v63  ;;  %v820_v26 = vsub.f32 0.0, %v2651_v46 }
 0x136   : > { %v2025_v45 = vpop.eup %2024  ;;  %2044 = vrcp.f32 %v1039_v6  ;;  %v1037_v43 = vadd.f32 1.0, %v2023_v60  ;;  %v2671_v35 = vadd.f32 %v2281_v33, %v2493_v28  ;;  %v852_v10 = vsub.f32 0.0, %v2657_v19 }
 0x137   : > { %v2027_v9 = vpop.eup %2026  ;;  %2046 = vrcp.f32 %v1005_v22  ;;  %v1010_v5 = vadd.f32 1.0, %v2025_v45  ;;  %v823_v13 = vsub.f32 0.0, %v2661_v1  ;;  %v855_v47 = vsub.f32 0.0, %v2665_v3 }
 0x138   : > { %v2029_v17 = vpop.eup %2028  ;;  %2048 = vrcp.f32 %v1037_v43  ;;  %v1042_v41 = vadd.f32 1.0, %v2027_v9  ;;  %v2678_v16 = vadd.f32 %v2281_v33, %v2498_v12  ;;  %v972_v18 = vmul.f32 1.442695, %v854_v52 }
 0x139   : > { %v2031_v36 = vpop.eup %2030  ;;  %2050 = vrcp.f32 %v1010_v5  ;;  %v1008_v30 = vadd.f32 1.0, %v2029_v17  ;;  %v821_v58 = vsub.f32 0.0, %v2671_v35  ;;  %v904_v56 = vmul.f32 1.442695, %v820_v26 }
 0x13a   : > { %v2033_v20 = vpop.eup %2032  ;;  %2052 = vrcp.f32 %v1042_v41  ;;  %v1040_v28 = vadd.f32 1.0, %v2031_v36  ;;  %v2683_v62 = vadd.f32 %v2523_v25, %v2281_v33  ;;  %v968_v21 = vmul.f32 1.442695, %v852_v10 }
 0x13b   : > { %v2035_v57 = vpop.eup %2034  ;;  %2054 = vrcp.f32 %v1008_v30  ;;  %v1011_v2 = vadd.f32 1.0, %v2033_v20  ;;  %v910_v12 = vmul.f32 1.442695, %v823_v13  ;;  %v974_v15 = vmul.f32 1.442695, %v855_v47 }
 0x13c   : > { %v2037_v37 = vpop.eup %2036  ;;  %2056 = vrcp.f32 %v1040_v28  ;;  %v1043_v4 = vadd.f32 1.0, %v2035_v57  ;;  %v853_v6 = vsub.f32 0.0, %v2678_v16  ;;  %v906_v45 = vmul.f32 1.442695, %v821_v58 }
 0x13d   : > { %v2039_v38 = vpop.eup %2038  ;;  %2058 = vrcp.f32 %v1011_v2  ;;  %v1009_v61 = vadd.f32 1.0, %v2037_v37  ;;  %v2689_v25 = vadd.f32 %v2531_v31, %v2281_v33  ;;  %v826_v9 = vsub.f32 0.0, %v2683_v62 }
 0x13e   : > { %v2041_v60 = vpop.eup %2040  ;;  %v1132_v22 = vmul.f32 %v2039_v38, %v2458_v55  ;;  %2060 = vrcp.f32 %v1043_v4  ;;  %v2695_v5 = vadd.f32 %v2281_v33, %v2533_v39  ;;  %v2700_v31 = vadd.f32 %v2281_v33, %v2538_v54 }
 0x13f   : > { %v2043_v43 = vpop.eup %2042  ;;  %v1164_v52 = vmul.f32 %v2041_v60, %v2467_v29  ;;  %2062 = vrcp.f32 %v1009_v61  ;;  %v970_v13 = vmul.f32 1.442695, %v853_v6  ;;  %v916_v58 = vmul.f32 1.442695, %v826_v9 }
 0x140   : > { %v2045_v26 = vpop.eup %2044  ;;  %v1714_v17 = vpack.c.bf16 %v1132_v22, %v1132_v22  ;;  %v1135_v55 = vmul.f32 %v2043_v43, %v2478_v7  ;;  %2064 = vpow2.f32 %v962_v48  ;;  %v858_v7 = vsub.f32 0.0, %v2689_v25 }
 0x141   : > { %v2047_v41 = vpop.eup %2046  ;;  %v1746_v10 = vpack.c.bf16 %v1164_v52, %v1164_v52  ;;  %v1167_v29 = vmul.f32 %v2045_v26, %v2489_v11  ;;  %2066 = vpow2.f32 %v908_v53  ;;  %v824_v11 = vsub.f32 0.0, %v2695_v5  ;;  %v2896_v26 = vld [vmem:[#allocation2_spill] sm:$0xff] }
 0x142   : > { %v2049_v36 = vpop.eup %2048  ;;  %1453 = vst.msk [vmem:[%s2409_s25 + $0x30] sm:$0xf] %vm1440_vm1, %v1714_v17  ;;  %v1717_v39 = vpack.c.bf16 %v1135_v55, %v1135_v55  ;;  %v1133_v30 = vmul.f32 %v2047_v41, %v2508_v14  ;;  %2068 = vpow2.f32 %v972_v18  ;;  %v856_v20 = vsub.f32 0.0, %v2700_v31 }
 0x143   : > { %v2051_v48 = vpop.eup %2050  ;;  %1485 = vst.msk [vmem:[%s2409_s25 + $0xb0] sm:$0xf] %vm1440_vm1, %v1746_v10  ;;  %v1749_v33 = vpack.c.bf16 %v1167_v29, %v1167_v29  ;;  %v1165_v54 = vmul.f32 %v2049_v36, %v2515_v50  ;;  %2070 = vpow2.f32 %v904_v56  ;;  %v2897_v10 = vld [vmem:[#allocation3_spill] sm:$0xff]  ;;  %v2898_v36 = vld [vmem:[#allocation4_spill] sm:$0xff] }
 0x144   : > { %v2053_v53 = vpop.eup %2052  ;;  %1456 = vst.msk [vmem:[%s2409_s25 + $0x3c] sm:$0xf] %vm1440_vm1, %v1717_v39  ;;  %v1715_v47 = vpack.c.bf16 %v1133_v30, %v1133_v30  ;;  %v1138_v14 = vmul.f32 %v2051_v48, %v2521_v40  ;;  %2072 = vpow2.f32 %v968_v21  ;;  %v980_v40 = vmul.f32 1.442695, %v858_v7 }
 0x145   : > { %v2055_v28 = vpop.eup %2054  ;;  %1488 = vst.msk [vmem:[%s2409_s25 + $0xbc] sm:$0xf] %vm1440_vm1, %v1749_v33  ;;  %v1747_v18 = vpack.c.bf16 %v1165_v54, %v1165_v54  ;;  %v1170_v50 = vmul.f32 %v2053_v53, %v2529_v51  ;;  %2074 = vpow2.f32 %v910_v12  ;;  %v912_v51 = vmul.f32 1.442695, %v824_v11  ;;  %v2899_v33 = vld [vmem:[#allocation5_spill] sm:$0xff] }
 0x146   : > { %v2057_v57 = vpop.eup %2056  ;;  %1454 = vst.msk [vmem:[%s2409_s25 + $0x34] sm:$0xf] %vm1440_vm1, %v1715_v47  ;;  %v1720_v2 = vpack.c.bf16 %v1138_v14, %v1138_v14  ;;  %v1136_v56 = vmul.f32 %v2055_v28, %v2550_v49  ;;  %2076 = vpow2.f32 %v974_v15  ;;  %v976_v49 = vmul.f32 1.442695, %v856_v20  ;;  %v2900_v14 = vld [vmem:[#allocation6_spill] sm:$0xff] }
 0x147   : > { %v2059_v37 = vpop.eup %2058  ;;  %1486 = vst.msk [vmem:[%s2409_s25 + $0xb4] sm:$0xf] %vm1440_vm1, %v1747_v18  ;;  %v1752_v4 = vpack.c.bf16 %v1170_v50, %v1170_v50  ;;  %v1168_v21 = vmul.f32 %v2057_v57, %v2559_v32  ;;  %2078 = vpow2.f32 %v906_v45 }
 0x148   : > { %v2061_v12 = vpop.eup %2060  ;;  %1459 = vst.msk [vmem:[%s2409_s25 + $0x48] sm:$0xf] %vm1440_vm1, %v1720_v2  ;;  %v1718_v38 = vpack.c.bf16 %v1136_v56, %v1136_v56  ;;  %v1139_v61 = vmul.f32 %v2059_v37, %v2563_v23  ;;  %2080 = vpow2.f32 %v970_v13  ;;  %v2736_v23 = vld [vmem:[%s2886_s2] ss:$0 sm:$0xff] }
 0x149   : > { %v2063_v15 = vpop.eup %2062  ;;  %1491 = vst.msk [vmem:[%s2409_s25 + $0xc8] sm:$0xf] %vm1440_vm1, %v1752_v4  ;;  %v1750_v6 = vpack.c.bf16 %v1168_v21, %v1168_v21  ;;  %v1171_v60 = vmul.f32 %v2061_v12, %v2568_v34  ;;  %2082 = vpow2.f32 %v916_v58  ;;  %v2740_v43 = vadd.f32 %v2736_v23, %v2540_v59  ;;  %v2901_v58 = vld [vmem:[#allocation7_spill] sm:$0xff] }
 0x14a   : > { %v2065_v32 = vpop.eup %2064  ;;  %1457 = vst.msk [vmem:[%s2409_s25 + $0x40] sm:$0xf] %vm1440_vm1, %v1718_v38  ;;  %v1721_v22 = vpack.c.bf16 %v1139_v61, %v1139_v61  ;;  %v1137_v45 = vmul.f32 %v2063_v15, %v2582_v42  ;;  %2084 = vpow2.f32 %v980_v40  ;;  %v2746_v42 = vadd.f32 %v2736_v23, %v2896_v26 }
 0x14b   : > { %v2067_v34 = vpop.eup %2066  ;;  %1489 = vst.msk [vmem:[%s2409_s25 + $0xc0] sm:$0xf] %vm1440_vm1, %v1750_v6  ;;  %v1753_v52 = vpack.c.bf16 %v1171_v60, %v1171_v60  ;;  %v1041_v9 = vadd.f32 1.0, %v2065_v32  ;;  %2086 = vpow2.f32 %v912_v51  ;;  %v2752_v59 = vadd.f32 %v2736_v23, %v2897_v10 }
 0x14c   : > { %v2069_v17 = vpop.eup %2068  ;;  %1460 = vst.msk [vmem:[%s2409_s25 + $0x4c] sm:$0xf] %vm1440_vm1, %v1721_v22  ;;  %v1719_v55 = vpack.c.bf16 %v1137_v45, %v1137_v45  ;;  %v1014_v41 = vadd.f32 1.0, %v2067_v34  ;;  %2088 = vpow2.f32 %v976_v49  ;;  %v2758_v39 = vadd.f32 %v2736_v23, %v2898_v36 }
 0x14d   : > { %v2071_v29 = vpop.eup %2070  ;;  %1492 = vst.msk [vmem:[%s2409_s25 + $0xcc] sm:$0xf] %vm1440_vm1, %v1753_v52  ;;  %2090 = vrcp.f32 %v1041_v9  ;;  %v1046_v13 = vadd.f32 1.0, %v2069_v17  ;;  %v827_v48 = vsub.f32 0.0, %v2740_v43  ;;  %v2765_v54 = vadd.f32 %v2736_v23, %v2899_v33 }
 0x14e   : > { %v2073_v30 = vpop.eup %2072  ;;  %1458 = vst.msk [vmem:[%s2409_s25 + $0x44] sm:$0xf] %vm1440_vm1, %v1719_v55  ;;  %2092 = vrcp.f32 %v1014_v41  ;;  %v1012_v7 = vadd.f32 1.0, %v2071_v29  ;;  %v859_v47 = vsub.f32 0.0, %v2746_v42  ;;  %v2770_v20 = vadd.f32 %v2736_v23, %v2900_v14  ;;  %v2902_v55 = vld [vmem:[#allocation8_spill] sm:$0xff]  ;;  %v2903_v14 = vld [vmem:[#allocation9_spill] sm:$0xff] }
 0x14f   : > { %v2075_v11 = vpop.eup %2074  ;;  %2094 = vrcp.f32 %v1046_v13  ;;  %v1044_v53 = vadd.f32 1.0, %v2073_v30  ;;  %v825_v50 = vsub.f32 0.0, %v2752_v59  ;;  %v2775_v57 = vadd.f32 %v2736_v23, %v2901_v58 }
 0x150   : > { %v2077_v28 = vpop.eup %2076  ;;  %2096 = vrcp.f32 %v1012_v7  ;;  %v1015_v18 = vadd.f32 1.0, %v2075_v11  ;;  %v857_v40 = vsub.f32 0.0, %v2758_v39  ;;  %v2780_v37 = vadd.f32 %v2736_v23, %v2584_v8 }
 0x151   : > { %v2079_v2 = vpop.eup %2078  ;;  %2098 = vrcp.f32 %v1044_v53  ;;  %v1047_v56 = vadd.f32 1.0, %v2077_v28  ;;  %v918_v51 = vmul.f32 1.442695, %v827_v48  ;;  %v830_v12 = vsub.f32 0.0, %v2765_v54 }
 0x152   : > { %v2081_v4 = vpop.eup %2080  ;;  %2100 = vrcp.f32 %v1015_v18  ;;  %v1013_v21 = vadd.f32 1.0, %v2079_v2  ;;  %v982_v49 = vmul.f32 1.442695, %v859_v47  ;;  %v862_v15 = vsub.f32 0.0, %v2770_v20 }
 0x153   : > { %v2083_v38 = vpop.eup %2082  ;;  %2102 = vrcp.f32 %v1047_v56  ;;  %v1045_v61 = vadd.f32 1.0, %v2081_v4  ;;  %v914_v32 = vmul.f32 1.442695, %v825_v50  ;;  %v828_v22 = vsub.f32 0.0, %v2775_v57 }
 0x154   : > { %v2085_v6 = vpop.eup %2084  ;;  %2104 = vrcp.f32 %v1013_v21  ;;  %v1018_v60 = vadd.f32 1.0, %v2083_v38  ;;  %v978_v34 = vmul.f32 1.442695, %v857_v40  ;;  %v860_v52 = vsub.f32 0.0, %v2780_v37 }
 0x155   : > { %v2087_v8 = vpop.eup %2086  ;;  %2106 = vrcp.f32 %v1045_v61  ;;  %v1050_v45 = vadd.f32 1.0, %v2085_v6  ;;  %v924_v17 = vmul.f32 1.442695, %v830_v12  ;;  %v2788_v41 = vadd.f32 %v2736_v23, %v2902_v55 }
 0x156   : > { %v2089_v9 = vpop.eup %2088  ;;  %2108 = vrcp.f32 %v1018_v60  ;;  %v1016_v26 = vadd.f32 1.0, %v2087_v8  ;;  %v988_v13 = vmul.f32 1.442695, %v862_v15  ;;  %v2792_v36 = vadd.f32 %v2736_v23, %v2590_v27 }
 0x157   : > { %v2091_v10 = vpop.eup %2090  ;;  %2110 = vrcp.f32 %v1050_v45  ;;  %v1048_v29 = vadd.f32 1.0, %v2089_v9  ;;  %v920_v48 = vmul.f32 1.442695, %v828_v22  ;;  %v2797_v33 = vadd.f32 %v2736_v23, %v2592_v24 }
 0x158   : > { %v2093_v30 = vpop.eup %2092  ;;  %v1169_v7 = vmul.f32 %v2091_v10, %v2619_v0  ;;  %2112 = vrcp.f32 %v1016_v26  ;;  %v984_v47 = vmul.f32 1.442695, %v860_v52  ;;  %v2802_v28 = vadd.f32 %v2736_v23, %v2903_v14 }
 0x159   : > { %v2095_v11 = vpop.eup %2094  ;;  %v1142_v53 = vmul.f32 %v2093_v30, %v2629_v44  ;;  %2114 = vrcp.f32 %v1048_v29  ;;  %v831_v50 = vsub.f32 0.0, %v2788_v41  ;;  %v863_v44 = vsub.f32 0.0, %v2792_v36 }
 0x15a   : > { %v2097_v27 = vpop.eup %2096  ;;  %v1751_v18 = vpack.c.bf16 %v1169_v7, %v1169_v7  ;;  %v1174_v0 = vmul.f32 %v2095_v11, %v2642_v63  ;;  %2116 = vpow2.f32 %v918_v51  ;;  %v829_v63 = vsub.f32 0.0, %v2797_v33 }
 0x15b   : > { %v2099_v24 = vpop.eup %2098  ;;  %v1724_v58 = vpack.c.bf16 %v1142_v53, %v1142_v53  ;;  %v1140_v2 = vmul.f32 %v2097_v27, %v2651_v46  ;;  %2118 = vpow2.f32 %v982_v49  ;;  %v861_v51 = vsub.f32 0.0, %v2802_v28 }
 0x15c   : > { %v2101_v56 = vpop.eup %2100  ;;  %1490 = vst.msk [vmem:[%s2409_s25 + $0xc4] sm:$0xf] %vm1440_vm1, %v1751_v18  ;;  %v1756_v23 = vpack.c.bf16 %v1174_v0, %v1174_v0  ;;  %v1172_v40 = vmul.f32 %v2099_v24, %v2657_v19  ;;  %2120 = vpow2.f32 %v914_v32  ;;  %v926_v61 = vmul.f32 1.442695, %v831_v50 }
 0x15d   : > { %v2103_v4 = vpop.eup %2102  ;;  %1463 = vst.msk [vmem:[%s2409_s25 + $0x58] sm:$0xf] %vm1440_vm1, %v1724_v58  ;;  %v1722_v21 = vpack.c.bf16 %v1140_v2, %v1140_v2  ;;  %v1143_v46 = vmul.f32 %v2101_v56, %v2661_v1  ;;  %2122 = vpow2.f32 %v978_v34  ;;  %v990_v1 = vmul.f32 1.442695, %v863_v44 }
 0x15e   : > { %v2105_v12 = vpop.eup %2104  ;;  %1495 = vst.msk [vmem:[%s2409_s25 + $0xd8] sm:$0xf] %vm1440_vm1, %v1756_v23  ;;  %v1754_v38 = vpack.c.bf16 %v1172_v40, %v1172_v40  ;;  %v1175_v19 = vmul.f32 %v2103_v4, %v2665_v3  ;;  %2124 = vpow2.f32 %v924_v17  ;;  %v922_v3 = vmul.f32 1.442695, %v829_v63 }
 0x15f   : > { %v2107_v49 = vpop.eup %2106  ;;  %1461 = vst.msk [vmem:[%s2409_s25 + $0x50] sm:$0xf] %vm1440_vm1, %v1722_v21  ;;  %v1725_v15 = vpack.c.bf16 %v1143_v46, %v1143_v46  ;;  %v1141_v6 = vmul.f32 %v2105_v12, %v2671_v35  ;;  %2126 = vpow2.f32 %v988_v13  ;;  %v986_v35 = vmul.f32 1.442695, %v861_v51 }
 0x160   : > { %v2109_v60 = vpop.eup %2108  ;;  %1493 = vst.msk [vmem:[%s2409_s25 + $0xd0] sm:$0xf] %vm1440_vm1, %v1754_v38  ;;  %v1757_v32 = vpack.c.bf16 %v1175_v19, %v1175_v19  ;;  %v1173_v22 = vmul.f32 %v2107_v49, %v2678_v16  ;;  %2128 = vpow2.f32 %v920_v48 }
 0x161   : > { %v2111_v8 = vpop.eup %2110  ;;  %1464 = vst.msk [vmem:[%s2409_s25 + $0x5c] sm:$0xf] %vm1440_vm1, %v1725_v15  ;;  %v1723_v45 = vpack.c.bf16 %v1141_v6, %v1141_v6  ;;  %v1146_v34 = vmul.f32 %v2109_v60, %v2683_v62  ;;  %2130 = vpow2.f32 %v984_v47 }
 0x162   : > { %v2113_v52 = vpop.eup %2112  ;;  %1496 = vst.msk [vmem:[%s2409_s25 + $0xdc] sm:$0xf] %vm1440_vm1, %v1757_v32  ;;  %v1755_v9 = vpack.c.bf16 %v1173_v22, %v1173_v22  ;;  %v1178_v26 = vmul.f32 %v2111_v8, %v2689_v25  ;;  %2132 = vpow2.f32 %v926_v61 }
 0x163   : > { %v2115_v16 = vpop.eup %2114  ;;  %1462 = vst.msk [vmem:[%s2409_s25 + $0x54] sm:$0xf] %vm1440_vm1, %v1723_v45  ;;  %v1728_v17 = vpack.c.bf16 %v1146_v34, %v1146_v34  ;;  %v1144_v55 = vmul.f32 %v2113_v52, %v2695_v5  ;;  %2134 = vpow2.f32 %v990_v1 }
 0x164   : > { %v2117_v62 = vpop.eup %2116  ;;  %1494 = vst.msk [vmem:[%s2409_s25 + $0xd4] sm:$0xf] %vm1440_vm1, %v1755_v9  ;;  %v1760_v10 = vpack.c.bf16 %v1178_v26, %v1178_v26  ;;  %v1176_v29 = vmul.f32 %v2115_v16, %v2700_v31  ;;  %2136 = vpow2.f32 %v922_v3 }
 0x165   : > { %v2119_v13 = vpop.eup %2118  ;;  %1467 = vst.msk [vmem:[%s2409_s25 + $0x68] sm:$0xf] %vm1440_vm1, %v1728_v17  ;;  %v1726_v25 = vpack.c.bf16 %v1144_v55, %v1144_v55  ;;  %v1019_v30 = vadd.f32 1.0, %v2117_v62  ;;  %2138 = vpow2.f32 %v986_v35 }
 0x166   : > { %v2121_v7 = vpop.eup %2120  ;;  %1499 = vst.msk [vmem:[%s2409_s25 + $0xe8] sm:$0xf] %vm1440_vm1, %v1760_v10  ;;  %v1758_v5 = vpack.c.bf16 %v1176_v29, %v1176_v29  ;;  %v1051_v48 = vadd.f32 1.0, %v2119_v13 }
 0x167   : > { %v2123_v11 = vpop.eup %2122  ;;  %1465 = vst.msk [vmem:[%s2409_s25 + $0x60] sm:$0xf] %vm1440_vm1, %v1726_v25  ;;  %2140 = vrcp.f32 %v1019_v30  ;;  %v1017_v53 = vadd.f32 1.0, %v2121_v7 }
 0x168   : > { %v2125_v47 = vpop.eup %2124  ;;  %1497 = vst.msk [vmem:[%s2409_s25 + $0xe0] sm:$0xf] %vm1440_vm1, %v1758_v5  ;;  %2142 = vrcp.f32 %v1051_v48  ;;  %v1049_v31 = vadd.f32 1.0, %v2123_v11 }
 0x169   : > { %v2127_v14 = vpop.eup %2126  ;;  %2144 = vrcp.f32 %v1017_v53  ;;  %v1022_v27 = vadd.f32 1.0, %v2125_v47 }
 0x16a   : > { %v2129_v18 = vpop.eup %2128  ;;  %2146 = vrcp.f32 %v1049_v31  ;;  %v1054_v0 = vadd.f32 1.0, %v2127_v14 }
 0x16b   : > { %v2131_v50 = vpop.eup %2130  ;;  %2148 = vrcp.f32 %v1022_v27  ;;  %v1020_v24 = vadd.f32 1.0, %v2129_v18 }
 0x16c   : > { %v2133_v58 = vpop.eup %2132  ;;  %2150 = vrcp.f32 %v1054_v0  ;;  %v1052_v2 = vadd.f32 1.0, %v2131_v50 }
 0x16d   : > { %v2135_v44 = vpop.eup %2134  ;;  %2152 = vrcp.f32 %v1020_v24  ;;  %v1023_v56 = vadd.f32 1.0, %v2133_v58 }
 0x16e   : > { %v2137_v23 = vpop.eup %2136  ;;  %2154 = vrcp.f32 %v1052_v2  ;;  %v1055_v40 = vadd.f32 1.0, %v2135_v44 }
 0x16f   : > { %v2139_v63 = vpop.eup %2138  ;;  %2156 = vrcp.f32 %v1023_v56  ;;  %v1021_v4 = vadd.f32 1.0, %v2137_v23 }
 0x170   : > { %2158 = vrcp.f32 %v1055_v40  ;;  %v1053_v21 = vadd.f32 1.0, %v2139_v63 }
 0x171   : > { %v2141_v46 = vpop.eup %2140  ;;  %2160 = vrcp.f32 %v1021_v4 }
 0x172   : > { %v2143_v51 = vpop.eup %2142  ;;  %v1147_v12 = vmul.f32 %v2141_v46, %v2740_v43  ;;  %2162 = vrcp.f32 %v1053_v21 }
 0x173   : > { %v2145_v38 = vpop.eup %2144  ;;  %v1179_v19 = vmul.f32 %v2143_v51, %v2746_v42 }
 0x174   : > { %v2147_v61 = vpop.eup %2146  ;;  %v1729_v49 = vpack.c.bf16 %v1147_v12, %v1147_v12  ;;  %v1145_v15 = vmul.f32 %v2145_v38, %v2752_v59 }
 0x175   : > { %v2149_v6 = vpop.eup %2148  ;;  %v1761_v1 = vpack.c.bf16 %v1179_v19, %v1179_v19  ;;  %v1177_v60 = vmul.f32 %v2147_v61, %v2758_v39 }
 0x176   : > { %v2151_v32 = vpop.eup %2150  ;;  %1468 = vst.msk [vmem:[%s2409_s25 + $0x6c] sm:$0xf] %vm1440_vm1, %v1729_v49  ;;  %v1727_v22 = vpack.c.bf16 %v1145_v15, %v1145_v15  ;;  %v1150_v43 = vmul.f32 %v2149_v6, %v2765_v54 }
 0x177   : > { %v2153_v3 = vpop.eup %2152  ;;  %1500 = vst.msk [vmem:[%s2409_s25 + $0xec] sm:$0xf] %vm1440_vm1, %v1761_v1  ;;  %v1759_v42 = vpack.c.bf16 %v1177_v60, %v1177_v60  ;;  %v1182_v8 = vmul.f32 %v2151_v32, %v2770_v20 }
 0x178   : > { %v2155_v59 = vpop.eup %2154  ;;  %1466 = vst.msk [vmem:[%s2409_s25 + $0x64] sm:$0xf] %vm1440_vm1, %v1727_v22  ;;  %v1732_v45 = vpack.c.bf16 %v1150_v43, %v1150_v43  ;;  %v1148_v39 = vmul.f32 %v2153_v3, %v2775_v57 }
 0x179   : > { %v2157_v34 = vpop.eup %2156  ;;  %1498 = vst.msk [vmem:[%s2409_s25 + $0xe4] sm:$0xf] %vm1440_vm1, %v1759_v42  ;;  %v1764_v35 = vpack.c.bf16 %v1182_v8, %v1182_v8  ;;  %v1180_v54 = vmul.f32 %v2155_v59, %v2780_v37 }
 0x17a   : > { %v2159_v52 = vpop.eup %2158  ;;  %1471 = vst.msk [vmem:[%s2409_s25 + $0x78] sm:$0xf] %vm1440_vm1, %v1732_v45  ;;  %v1730_v20 = vpack.c.bf16 %v1148_v39, %v1148_v39  ;;  %v1151_v9 = vmul.f32 %v2157_v34, %v2788_v41 }
 0x17b   : > { %v2161_v26 = vpop.eup %2160  ;;  %1503 = vst.msk [vmem:[%s2409_s25 + $0xf8] sm:$0xf] %vm1440_vm1, %v1764_v35  ;;  %v1762_v57 = vpack.c.bf16 %v1180_v54, %v1180_v54  ;;  %v1183_v16 = vmul.f32 %v2159_v52, %v2792_v36 }
 0x17c   : > { %v2163_v17 = vpop.eup %2162  ;;  %1469 = vst.msk [vmem:[%s2409_s25 + $0x70] sm:$0xf] %vm1440_vm1, %v1730_v20  ;;  %v1733_v37 = vpack.c.bf16 %v1151_v9, %v1151_v9  ;;  %v1149_v55 = vmul.f32 %v2161_v26, %v2797_v33 }
 0x17d   : > { %1501 = vst.msk [vmem:[%s2409_s25 + $0xf0] sm:$0xf] %vm1440_vm1, %v1762_v57  ;;  %v1765_v62 = vpack.c.bf16 %v1183_v16, %v1183_v16  ;;  %v1181_v10 = vmul.f32 %v2163_v17, %v2802_v28 }
 0x17e   : > { %1472 = vst.msk [vmem:[%s2409_s25 + $0x7c] sm:$0xf] %vm1440_vm1, %v1733_v37  ;;  %v1731_v41 = vpack.c.bf16 %v1149_v55, %v1149_v55 }
 0x17f   : > { %1504 = vst.msk [vmem:[%s2409_s25 + $0xfc] sm:$0xf] %vm1440_vm1, %v1765_v62  ;;  %v1763_v29 = vpack.c.bf16 %v1181_v10, %v1181_v10 }
 0x180   : > { %1470 = vst.msk [vmem:[%s2409_s25 + $0x74] sm:$0xf] %vm1440_vm1, %v1731_v41 }
 0x181   : > { %1502 = vst.msk [vmem:[%s2409_s25 + $0xf4] sm:$0xf] %vm1440_vm1, %v1763_v29 }
 0x182 PF: > { %s13_s12 = sadd.s32 1, %s2171_s12  }
 0x183   : > { %p10_p4 = scmp.ge.s32.totalorder %s13_s12, 6  }
 0x185   :  { %12 = sbr.rel (!%p10_p4) target bundleno = 1 (0x1), region = 62 }

</bundles_post_ra>
